<compile_context>
chip_gen: v7x
topology: tpu7x:2x2x1
jax: 0.10.0
libtpu: 0.0.40
codegen_flags: <defaults>
</compile_context>

<pallas_src>
import jax
import jax.numpy as jnp
from jax.experimental import pallas as pl
from jax.experimental.pallas import tpu as pltpu


# ----------------------------------------------------------------------------
# Kernel
# ----------------------------------------------------------------------------
def _down_pixel_pos_kernel(x_ref, perm_ref, bias_ref, o_ref):
    """x_ref: (1, C, HW)  perm_ref: (HW, HW)  bias_ref: (1, HW)  o_ref: (1, C, HW).

    out[c, dst] = sum_src x[c, src] * perm[src, dst] + bias[dst]
    perm is a 0/1 permutation matrix -> exact gather along the lane dim via MXU.
    """
    y = jnp.dot(x_ref[0], perm_ref[...], preferred_element_type=jnp.float32)
    o_ref[0] = (y + bias_ref[...]).astype(o_ref.dtype)


# ----------------------------------------------------------------------------
# Wrapper
# ----------------------------------------------------------------------------
def _perm_and_bias(pos_ss, h, w, stride):
    """Build the (HW, HW) unshuffle permutation and the (1, HW) position bias."""
    s = stride
    hs, ws, hw = h // s, w // s, h * w
    dst = jnp.arange(hw)
    si = dst // (s * hs * ws)
    sj = (dst // (hs * ws)) % s
    i = (dst // ws) % hs
    j = dst % ws
    src = (i * s + si) * w + (j * s + sj)
    perm = (jnp.arange(hw)[:, None] == src[None, :]).astype(jnp.float32)
    bias = pos_ss.reshape(-1)[si * s + sj].astype(jnp.float32).reshape(1, hw)
    return perm, bias


def down_pixel_pos(x, pos_ss, *, stride=2):
    """x: (b, c, h, w) NCHW, pos_ss: (stride, stride) -> (b, c*stride**2, h/s, w/s)."""
    b, c, h, w = x.shape
    s = stride
    hs, ws, hw = h // s, w // s, h * w

    perm, bias = _perm_and_bias(pos_ss, h, w, s)

    # Contiguous dim-merge only (no data permutation): layout plumbing.
    xf = x.reshape(b, c, hw)

    out_flat = pl.pallas_call(
        _down_pixel_pos_kernel,
        out_shape=jax.ShapeDtypeStruct((b, c, hw), x.dtype),
        grid=(b,),
        in_specs=[
            pl.BlockSpec((1, c, hw), lambda n: (n, 0, 0)),
            pl.BlockSpec((hw, hw), lambda n: (0, 0)),   # constant block: DMA'd once
            pl.BlockSpec((1, hw), lambda n: (0, 0)),
        ],
        out_specs=pl.BlockSpec((1, c, hw), lambda n: (n, 0, 0)),
        compiler_params=pltpu.CompilerParams(
            dimension_semantics=("parallel",)),
    )(xf, perm, bias)

    # Contiguous dim-split/merge only: (b, c, s*s*hs*ws) -> (b, c*s*s, hs, ws).
    return out_flat.reshape(b, c * s * s, hs, ws)


# ----------------------------------------------------------------------------
# Pure-JAX reference (mirrors the PyTorch forward exactly)
# ----------------------------------------------------------------------------
def down_pixel_pos_ref(x, pos_ss, *, stride=2):
    b, c, h, w = x.shape
    s = stride
    x6 = x.reshape(b, c, h // s, s, w // s, s)
    x6 = x6 + pos_ss.reshape(1, 1, 1, s, 1, s)
    out = jnp.transpose(x6, (0, 1, 3, 5, 2, 4))
    return out.reshape(b, c * s * s, h // s, w // s)


# ----------------------------------------------------------------------------
if __name__ == "__main__":
    key = jax.random.PRNGKey(0)
    k_x, k_pos = jax.random.split(key)

    b, c, h, w = 2, 4, 16, 16
    stride = 2

    x = jax.random.normal(k_x, (b, c, h, w), jnp.float32)
    # nn.Parameter of shape (1,1,1,s,1,s), trunc_normal_(std=0.02); stored as (s, s).
    pos_ss = 0.02 * jax.random.truncated_normal(
        k_pos, -2.0, 2.0, (stride, stride), jnp.float32)

    fwd = jax.jit(down_pixel_pos, static_argnames=("stride",))
    out = fwd(x, pos_ss, stride=stride)
    out = jax.block_until_ready(out)

    assert out.shape == (b, c * stride * stride, h // stride, w // stride), out.shape
    ref = down_pixel_pos_ref(x, pos_ss, stride=stride)
    assert bool(jnp.all(jnp.isfinite(out)))
    assert jnp.allclose(out, ref, atol=1e-6, rtol=1e-6), float(
        jnp.max(jnp.abs(out - ref)))
    print("KERNEL_OK")
</pallas_src>

<mosaic_0001>
module attributes {stable_mosaic.version = 11 : i64} {
  func.func @_down_pixel_pos_kernel(%arg0: i32, %arg1: memref<1x4x256xf32, #tpu.memory_space<vmem>>, %arg2: memref<256x256xf32, #tpu.memory_space<vmem>>, %arg3: memref<1x256xf32, #tpu.memory_space<vmem>>, %arg4: memref<1x4x256xf32, #tpu.memory_space<vmem>>) attributes {dimension_semantics = [#tpu.dimension_semantics<parallel>], iteration_bounds = array<i64: 2>, scalar_prefetch = 0 : i64, scratch_operands = 0 : i64, tpu.core_type = #tpu.core_type<tc>, window_params = [{transform_indices = @transform_0, window_bounds = array<i64: 1, 4, 256>}, {pipeline_mode = #tpu.pipeline_mode<synchronous>, transform_indices = @transform_1, window_bounds = array<i64: 256, 256>}, {pipeline_mode = #tpu.pipeline_mode<synchronous>, transform_indices = @transform_2, window_bounds = array<i64: 1, 256>}, {transform_indices = @transform_3, window_bounds = array<i64: 1, 4, 256>}]} {
    %c0 = arith.constant 0 : index
    %c0_0 = arith.constant 0 : index
    %c0_1 = arith.constant 0 : index
    %0 = vector.load %arg1[%c0, %c0_0, %c0_1] : memref<1x4x256xf32, #tpu.memory_space<vmem>>, vector<1x4x256xf32>
    %1 = vector.shape_cast %0 : vector<1x4x256xf32> to vector<4x256xf32>
    %c0_2 = arith.constant 0 : index
    %c0_3 = arith.constant 0 : index
    %2 = vector.load %arg2[%c0_2, %c0_3] : memref<256x256xf32, #tpu.memory_space<vmem>>, vector<256x256xf32>
    %cst = arith.constant dense<0.000000e+00> : vector<4x256xf32>
    %3 = tpu.matmul %1, %2, %cst {dimension_numbers = #tpu.dot_dimension_numbers<[1], [0], [0], [1], [0, 0, 1, 1], [], []>} : vector<4x256xf32>, vector<256x256xf32>, vector<4x256xf32> -> vector<4x256xf32>
    %c0_4 = arith.constant 0 : index
    %c0_5 = arith.constant 0 : index
    %4 = vector.load %arg3[%c0_4, %c0_5] : memref<1x256xf32, #tpu.memory_space<vmem>>, vector<1x256xf32>
    %5 = vector.broadcast %4 : vector<1x256xf32> to vector<4x256xf32>
    %6 = arith.addf %3, %5 : vector<4x256xf32>
    %c0_6 = arith.constant 0 : index
    %c0_7 = arith.constant 0 : index
    %c0_8 = arith.constant 0 : index
    %7 = vector.load %arg4[%c0_6, %c0_7, %c0_8] : memref<1x4x256xf32, #tpu.memory_space<vmem>>, vector<1x4x256xf32>
    %8 = vector.shape_cast %7 : vector<1x4x256xf32> to vector<4x256xf32>
    %9 = vector.shape_cast %6 : vector<4x256xf32> to vector<1x4x256xf32>
    tpu.vector_store %arg4[%c0_6, %c0_7, %c0_8], %9 {strides = array<i32>} : memref<1x4x256xf32, #tpu.memory_space<vmem>>, vector<1x4x256xf32>,
    return
  }
  func.func @transform_0(%arg0: i32) -> (i32, i32, i32) {
    %c0_i32 = arith.constant 0 : i32
    %c0_i32_0 = arith.constant 0 : i32
    %c0_i32_1 = arith.constant 0 : i32
    return %arg0, %c0_i32, %c0_i32_0 : i32, i32, i32
  }
  func.func @transform_1(%arg0: i32) -> (i32, i32) {
    %c0_i32 = arith.constant 0 : i32
    %c0_i32_0 = arith.constant 0 : i32
    %c0_i32_1 = arith.constant 0 : i32
    return %c0_i32, %c0_i32_0 : i32, i32
  }
  func.func @transform_2(%arg0: i32) -> (i32, i32) {
    %c0_i32 = arith.constant 0 : i32
    %c0_i32_0 = arith.constant 0 : i32
    %c0_i32_1 = arith.constant 0 : i32
    return %c0_i32, %c0_i32_0 : i32, i32
  }
  func.func @transform_3(%arg0: i32) -> (i32, i32, i32) {
    %c0_i32 = arith.constant 0 : i32
    %c0_i32_0 = arith.constant 0 : i32
    %c0_i32_1 = arith.constant 0 : i32
    return %arg0, %c0_i32, %c0_i32_0 : i32, i32, i32
  }
}

</mosaic_0001>

<bundles_post_ra>
// kernel: down_pixel_pos.1
= control target key start
LH: loop header
LB: loop body
LE: loop exit
PB: predicated region body
PF: predicated region fallthrough
CT: control target
= control target key end

     0   :  { %s496_s12 = smov 0   ;;  %s724_s0 = inlined_call_operand.vmem [shape: f32[2,4,256], index: 0, kind: input, shape index: {}]   ;;  %s725_s1 = inlined_call_operand.vmem [shape: f32[256,256], index: 1, kind: input, shape index: {}]   ;;  %s726_s2 = inlined_call_operand.vmem [shape: f32[1,256], index: 2, kind: input, shape index: {}]   ;;  %s727_s3 = inlined_call_operand.vmem [shape: f32[2,4,256], index: 3, kind: output, shape index: {}]  }
   0x1 LB: > { %s382_s13 = sadd.s32 4294967295, %s474_s12   ;;  %p386_p0 = scmp.ge.s32.totalorder %s474_s12, 1  ;;  %s474_s12 = sphi %s496_s12, %s13_s12  }
   0x2   : > { %p137_p1 = scmp.lt.s32.totalorder %s474_s12, 3 }
   0x4   : > { %p138_p2 = pnand %p386_p0, %p137_p1 }
   0x5   : > { %v173_v0 = vld [vmem:[%s725_s1 + $0x8] sm:$0xff] (!%p138_p2)  ;;  %v175_v1 = vld [vmem:[%s725_s1 + $0x18] sm:$0xff] (!%p138_p2)  ;;  %v172_v2 = vld [vmem:[%s725_s1] sm:$0xff] (!%p138_p2)  ;;  %p161_p3 = scmp.lt.s32.totalorder (!%p138_p2), %s382_s13, 1 }
   0x6   : > { %141 = sbr.rel (%p138_p2) target bundleno = 290 (0x122), region = 32  ;;  %v395_v3 = vpack.c.bf16 (!%p138_p2), %v175_v1, %v173_v0  ;;  %v174_v4 = vld [vmem:[%s725_s1 + $0x10] sm:$0xff] (!%p138_p2)  ;;  %v177_v5 = vld [vmem:[%s725_s1 + $0x28] sm:$0xff] (!%p138_p2)  ;;  %v179_v6 = vld [vmem:[%s725_s1 + $0x38] sm:$0xff] (!%p138_p2) }
   0x7   : > { %v397_v7 = vpack.c.bf16 (!%p138_p2), %v174_v4, %v172_v2  ;;  %v399_v8 = vpack.c.bf16 (!%p138_p2), %v179_v6, %v177_v5  ;;  %v176_v9 = vld [vmem:[%s725_s1 + $0x20] sm:$0xff] (!%p138_p2)  ;;  %v178_v10 = vld [vmem:[%s725_s1 + $0x30] sm:$0xff] (!%p138_p2)  ;;  %v181_v11 = vld [vmem:[%s725_s1 + $0x48] sm:$0xff] (!%p138_p2) }
   0x8   : > { %396 = vmatprep.subr.bf16.mxu0 (!%p138_p2), %v395_v3  ;;  %v183_v12 = vld [vmem:[%s725_s1 + $0x58] sm:$0xff] (!%p138_p2)  ;;  %v401_v13 = vpack.c.bf16 (!%p138_p2), %v178_v10, %v176_v9  ;;  %v180_v15 = vld [vmem:[%s725_s1 + $0x40] sm:$0xff] (!%p138_p2)  ;;  %v182_v16 = vld [vmem:[%s725_s1 + $0x50] sm:$0xff] (!%p138_p2) }
   0x9   : > { %398 = vmatpush1.bf16.msra.mxu0 (!%p138_p2), %v397_v7  ;;  %v403_v14 = vpack.c.bf16 (!%p138_p2), %v183_v12, %v181_v11  ;;  %v185_v17 = vld [vmem:[%s725_s1 + $0x68] sm:$0xff] (!%p138_p2)  ;;  %v187_v18 = vld [vmem:[%s725_s1 + $0x78] sm:$0xff] (!%p138_p2)  ;;  %v405_v19 = vpack.c.bf16 (!%p138_p2), %v182_v16, %v180_v15  ;;  %v184_v21 = vld [vmem:[%s725_s1 + $0x60] sm:$0xff] (!%p138_p2) }
   0xa   : > { %400 = vmatprep.subr.bf16.mxu0 (!%p138_p2), %v399_v8  ;;  %v407_v20 = vpack.c.bf16 (!%p138_p2), %v187_v18, %v185_v17  ;;  %v186_v22 = vld [vmem:[%s725_s1 + $0x70] sm:$0xff] (!%p138_p2)  ;;  %v189_v23 = vld [vmem:[%s725_s1 + $0x88] sm:$0xff] (!%p138_p2)  ;;  %v191_v24 = vld [vmem:[%s725_s1 + $0x98] sm:$0xff] (!%p138_p2) }
   0xb   : > { %v409_v25 = vpack.c.bf16 (!%p138_p2), %v186_v22, %v184_v21  ;;  %v411_v26 = vpack.c.bf16 (!%p138_p2), %v191_v24, %v189_v23  ;;  %v188_v27 = vld [vmem:[%s725_s1 + $0x80] sm:$0xff] (!%p138_p2)  ;;  %v190_v28 = vld [vmem:[%s725_s1 + $0x90] sm:$0xff] (!%p138_p2)  ;;  %v193_v29 = vld [vmem:[%s725_s1 + $0xa8] sm:$0xff] (!%p138_p2) }
   0xc   : > { %v195_v30 = vld [vmem:[%s725_s1 + $0xb8] sm:$0xff] (!%p138_p2)  ;;  %v413_v31 = vpack.c.bf16 (!%p138_p2), %v190_v28, %v188_v27  ;;  %v192_v33 = vld [vmem:[%s725_s1 + $0xa0] sm:$0xff] (!%p138_p2)  ;;  %v194_v34 = vld [vmem:[%s725_s1 + $0xb0] sm:$0xff] (!%p138_p2) }
   0xd   : > { %402 = vmatpush1.bf16.msra.mxu0 %v401_v13  ;;  %s729_s13 = smov (!%p161_p3, %s382_s13), 1  ;;  %v415_v32 = vpack.c.bf16 %v195_v30, %v193_v29  ;;  %v197_v35 = vld [vmem:[%s725_s1 + $0xc8] sm:$0xff]  ;;  %v199_v36 = vld [vmem:[%s725_s1 + $0xd8] sm:$0xff]  ;;  %v417_v37 = vpack.c.bf16 %v194_v34, %v192_v33  ;;  %v196_v39 = vld [vmem:[%s725_s1 + $0xc0] sm:$0xff]  ;;  %v238_v34 = vlaneseq }
   0xe   : > { %404 = vmatprep.subr.bf16.mxu0 %v403_v14  ;;  %s393_s6 = sshll.u32 %s729_s13, 3  ;;  %v419_v38 = vpack.c.bf16 %v199_v36, %v197_v35  ;;  %v198_v40 = vld [vmem:[%s725_s1 + $0xd0] sm:$0xff]  ;;  %v201_v42 = vld [vmem:[%s725_s1 + $0xe8] sm:$0xff]  ;;  %v203_v43 = vld [vmem:[%s725_s1 + $0xf8] sm:$0xff] }
   0xf   : > { %s165_s19 = scalar_lea.vmem %s724_s0, %s393_s6  ;;  %v421_v45 = vpack.c.bf16 %v198_v40, %v196_v39  ;;  %v423_v46 = vpack.c.bf16 %v203_v43, %v201_v42  ;;  %v200_v47 = vld [vmem:[%s725_s1 + $0xe0] sm:$0xff]  ;;  %v202_v48 = vld [vmem:[%s725_s1 + $0xf0] sm:$0xff]  ;;  %v205_v49 = vld [vmem:[%s725_s1 + $0x108] sm:$0xff]  ;;  %v239_v35 = vshrl.u32 %v238_v34, 7  ;;  %s170_s28 = scalar_lea.vmem %s727_s3, %s393_s6 }
  0x10   : > { %v600_v41 = vld [vmem:[%s165_s19] sm:$0xff]  ;;  %v207_v50 = vld [vmem:[%s725_s1 + $0x118] sm:$0xff]  ;;  %v425_v51 = vpack.c.bf16 %v202_v48, %v200_v47  ;;  %v206_v54 = vld [vmem:[%s725_s1 + $0x110] sm:$0xff] }
  0x11   : > { %406 = vmatpush1.bf16.msra.mxu0 %v405_v19  ;;  %v249_v44 = vcombine.high %v600_v41, %v600_v41  ;;  %v427_v52 = vpack.c.bf16 %v207_v50, %v205_v49  ;;  %v204_v53 = vld [vmem:[%s725_s1 + $0x100] sm:$0xff]  ;;  %v209_v55 = vld [vmem:[%s725_s1 + $0x128] sm:$0xff]  ;;  %v211_v56 = vld [vmem:[%s725_s1 + $0x138] sm:$0xff]  ;;  %v240_v36 = vsub.s32 0, %v239_v35 }
  0x12   : > { %408 = vmatprep.subr.bf16.mxu0 %v407_v20  ;;  %v429_v57 = vpack.c.bf16 %v206_v54, %v204_v53  ;;  %v431_v58 = vpack.c.bf16 %v211_v56, %v209_v55  ;;  %v208_v59 = vld [vmem:[%s725_s1 + $0x120] sm:$0xff]  ;;  %v210_v60 = vld [vmem:[%s725_s1 + $0x130] sm:$0xff]  ;;  %v213_v61 = vld [vmem:[%s725_s1 + $0x148] sm:$0xff] }
  0x13   : > { %315 = vmatprep.mubr.f32.mxu0 %v249_v44  ;;  %v215_v62 = vld [vmem:[%s725_s1 + $0x158] sm:$0xff]  ;;  %v433_v63 = vpack.c.bf16 %v210_v60, %v208_v59  ;;  %v212_v1 = vld [vmem:[%s725_s1 + $0x140] sm:$0xff]  ;;  %v214_v2 = vld [vmem:[%s725_s1 + $0x150] sm:$0xff] }
  0x14   : > { %v435_v0 = vpack.c.bf16 %v215_v62, %v213_v61  ;;  %v217_v3 = vld [vmem:[%s725_s1 + $0x168] sm:$0xff]  ;;  %v219_v4 = vld [vmem:[%s725_s1 + $0x178] sm:$0xff]  ;;  %v437_v5 = vpack.c.bf16 %v214_v2, %v212_v1  ;;  %v216_v7 = vld [vmem:[%s725_s1 + $0x160] sm:$0xff] }
  0x15   : > { %410 = vmatpush1.bf16.msra.mxu0 %v409_v25  ;;  %v439_v6 = vpack.c.bf16 %v219_v4, %v217_v3  ;;  %v218_v8 = vld [vmem:[%s725_s1 + $0x170] sm:$0xff]  ;;  %v221_v9 = vld [vmem:[%s725_s1 + $0x188] sm:$0xff]  ;;  %v223_v10 = vld [vmem:[%s725_s1 + $0x198] sm:$0xff] }
  0x16   : > { %412 = vmatprep.subr.bf16.mxu0 %v411_v26  ;;  %v441_v11 = vpack.c.bf16 %v218_v8, %v216_v7  ;;  %v443_v12 = vpack.c.bf16 %v223_v10, %v221_v9  ;;  %v220_v13 = vld [vmem:[%s725_s1 + $0x180] sm:$0xff]  ;;  %v222_v14 = vld [vmem:[%s725_s1 + $0x190] sm:$0xff]  ;;  %v225_v15 = vld [vmem:[%s725_s1 + $0x1a8] sm:$0xff] }
  0x17   : > { %v227_v16 = vld [vmem:[%s725_s1 + $0x1b8] sm:$0xff]  ;;  %v445_v17 = vpack.c.bf16 %v222_v14, %v220_v13  ;;  %v224_v19 = vld [vmem:[%s725_s1 + $0x1a0] sm:$0xff]  ;;  %v226_v20 = vld [vmem:[%s725_s1 + $0x1b0] sm:$0xff] }
  0x18   : > { %v447_v18 = vpack.c.bf16 %v227_v16, %v225_v15  ;;  %v229_v21 = vld [vmem:[%s725_s1 + $0x1c8] sm:$0xff]  ;;  %v231_v22 = vld [vmem:[%s725_s1 + $0x1d8] sm:$0xff]  ;;  %v449_v23 = vpack.c.bf16 %v226_v20, %v224_v19  ;;  %v228_v25 = vld [vmem:[%s725_s1 + $0x1c0] sm:$0xff] }
  0x19   : > { %414 = vmatpush1.bf16.msra.mxu0 %v413_v31  ;;  %v451_v24 = vpack.c.bf16 %v231_v22, %v229_v21  ;;  %v230_v26 = vld [vmem:[%s725_s1 + $0x1d0] sm:$0xff]  ;;  %v233_v27 = vld [vmem:[%s725_s1 + $0x1e8] sm:$0xff]  ;;  %v235_v28 = vld [vmem:[%s725_s1 + $0x1f8] sm:$0xff] }
  0x1a   : > { %416 = vmatprep.subr.bf16.mxu0 %v415_v32  ;;  %v453_v29 = vpack.c.bf16 %v230_v26, %v228_v25  ;;  %v455_v30 = vpack.c.bf16 %v235_v28, %v233_v27  ;;  %v232_v31 = vld [vmem:[%s725_s1 + $0x1e0] sm:$0xff]  ;;  %v234_v32 = vld [vmem:[%s725_s1 + $0x1f0] sm:$0xff] }
  0x1b   : > { %v457_v33 = vpack.c.bf16 %v234_v32, %v232_v31 }
  0x1d   : > { %418 = vmatpush1.bf16.msra.mxu0 %v417_v37  ;;  %v236_v37 = vld [vmem:[%s726_s2] sm:$0x3] }
  0x1e   : > { %420 = vmatprep.subr.bf16.mxu0 %v419_v38  ;;  %v244_v38 = vsub.s32 1, %v239_v35  ;;  %v241_v39 = vrot.slane %v236_v37, %v240_v36 }
  0x20   : > { %v245_v40 = vrot.slane %v236_v37, %v244_v38 }
  0x21   : > { %422 = vmatpush1.bf16.msra.mxu0 %v421_v45 }
  0x22   : > { %424 = vmatprep.subr.bf16.mxu0 %v423_v46 }
  0x25   : > { %426 = vmatpush1.bf16.msra.mxu0 %v425_v51 }
  0x26   : > { %428 = vmatprep.subr.bf16.mxu0 %v427_v52 }
  0x29   : > { %430 = vmatpush1.bf16.msra.mxu0 %v429_v57 }
  0x2a   : > { %432 = vmatprep.subr.bf16.mxu0 %v431_v58 }
  0x2d   : > { %434 = vmatpush1.bf16.msra.mxu0 %v433_v63 }
  0x2e   : > { %436 = vmatprep.subr.bf16.mxu0 %v435_v0 }
  0x31   : > { %438 = vmatpush1.bf16.msra.mxu0 %v437_v5 }
  0x32   : > { %440 = vmatprep.subr.bf16.mxu0 %v439_v6 }
  0x35   : > { %442 = vmatpush1.bf16.msra.mxu0 %v441_v11 }
  0x36   : > { %444 = vmatprep.subr.bf16.mxu0 %v443_v12 }
  0x39   : > { %446 = vmatpush1.bf16.msra.mxu0 %v445_v17 }
  0x3a   : > { %448 = vmatprep.subr.bf16.mxu0 %v447_v18 }
  0x3d   : > { %450 = vmatpush1.bf16.msra.mxu0 %v449_v23 }
  0x3e   : > { %452 = vmatprep.subr.bf16.mxu0 %v451_v24 }
  0x41   : > { %454 = vmatpush1.bf16.msra.mxu0 %v453_v29 }
  0x42   : > { %456 = vmatprep.subr.bf16.mxu0 %v455_v30 }
  0x45   : > { %458 = vmatpush1.bf16.msra.mxu0 %v457_v33 }
  0x48   : > { %316 = vmatmul.mubr.f32.vlgmr.msra.gmra.mrb[0].mxu0 %v600_v41 }
 0x11b   : > { %v317_v42 = vpop.f32.mrb[0].mxu0 }
 0x11c   : > { %v318_v43 = vadd.f32 %v317_v42, %v241_v39  ;;  %v319_v44 = vpop.f32.mrb[1].mxu0 }
 0x11d   : > { %v320_v45 = vadd.f32 %v319_v44, %v245_v40 }
 0x11f   : > { %v324_v41 = vcombine.low %v318_v43, %v320_v45 }
 0x121   : > { %326 = vst [vmem:[%s170_s28] sm:$0xff] %v324_v41 }
 0x122 PF: > { %s13_s12 = sadd.s32 1, %s474_s12  }
 0x123   : > { %p10_p4 = scmp.ge.s32.totalorder %s13_s12, 4  }
 0x125   :  { %12 = sbr.rel (!%p10_p4) target bundleno = 1 (0x1), region = 62 }

</bundles_post_ra>
